<compile_context>
chip_gen: v7x
topology: tpu7x:2x2x1
jax: 0.10.0
libtpu: 0.0.40
codegen_flags: <defaults>
</compile_context>

<pallas_src>
import functools

import jax
import jax.numpy as jnp
from jax.experimental import pallas as pl
from jax.experimental.pallas import tpu as pltpu


def _pool_kernel(x_ref, a_ref, o_ref, *, inv, digits):
    """x_ref: (GT, f*kh*W) rows; a_ref: (f*kh*W, f*out_W) 0/1 pooling matrix."""
    a = a_ref[...]  # bf16 indicator matrix (entries exactly 0.0 / 1.0)

    if digits == 1:
        # bf16 fast path: the input is exactly representable in bf16, so one
        # MXU pass gives the exact window sums (f32 accumulation).
        acc = jnp.dot(x_ref[...].astype(jnp.bfloat16), a,
                      preferred_element_type=jnp.float32)
    else:
        # Exact-enough f32 window sums via bf16 MXU matmuls:
        #   x == hi + mid (+ lo) up to ~2^-27 relative; the subtractions are
        #   exact in f32 and products with the 0/1 matrix are exact, so the
        #   only remaining error is f32 accumulation order (~1e-7 relative).
        x = x_ref[...].astype(jnp.float32)
        hi = x.astype(jnp.bfloat16)
        acc = jnp.dot(hi, a, preferred_element_type=jnp.float32)
        r1 = x - hi.astype(jnp.float32)
        mid = r1.astype(jnp.bfloat16)
        acc = acc + jnp.dot(mid, a, preferred_element_type=jnp.float32)
        if digits >= 3:
            lo = (r1 - mid.astype(jnp.float32)).astype(jnp.bfloat16)
            acc = acc + jnp.dot(lo, a, preferred_element_type=jnp.float32)

    # Keep `inv` as a separate f32 multiply (do NOT fold into bf16 A).
    o_ref[...] = (acc * inv).astype(o_ref.dtype)


def _choose_fold(G, R, out_W, max_fold=None, a_budget_bytes=1 << 20):
    """Fold f consecutive output rows into one matmul row so the output lane
    dimension approaches 128 (lane-dense stores, better MXU columns)."""
    if out_W >= 128:
        return 1
    f_target = max(1, 128 // out_W)
    if max_fold is not None:
        f_target = min(f_target, int(max_fold))
    best = 1
    for f in range(1, f_target + 1):
        if f * f * R * out_W * 2 > a_budget_bytes:  # bf16 block-diagonal A
            break
        if G % f == 0:
            best = f
    return best


def _choose_block_rows(G, row_bytes, target_bytes):
    """Rows of the fused (folded) axis processed per grid step."""
    rows = max(1, target_bytes // max(row_bytes, 1))
    rows = max(8, (rows // 8) * 8)  # sublane-aligned
    # Target >= 8 grid steps (>= 4 per TensorCore on v7x megacore) so the
    # BlockSpec double buffer always has a next step to overlap with and the
    # two cores stay balanced.
    cap = max(8, ((G // 8) // 8) * 8)
    rows = min(rows, cap)
    if rows >= G:
        return G  # single full-extent block (allowed even if G % 8 != 0)
    return rows


def adaptive_avg_pool2d_efficient(x, output_size, *, block_bytes=4 << 20,
                                  max_fold=None):
    """Matches MyAdaptiveAvgPool2dEfficient.forward for NCHW input."""
    if isinstance(output_size, int):
        output_size = (output_size, output_size)
    N, C, H, W = x.shape
    out_H, out_W = output_size
    if H % out_H != 0 or W % out_W != 0:
        raise ValueError(
            "For this efficient implementation, H and W must be divisible by "
            "out_H and out_W.")
    if not jnp.issubdtype(x.dtype, jnp.floating):
        raise ValueError("Only float32/float16/bfloat16 inputs are supported.")

    kh = H // out_H
    kw = W // out_W

    G = N * C * out_H          # fused row axis (one output row per entry)
    R = kh * W                 # contiguous input elements feeding one out row

    # Number of exact bf16 "digits" needed to represent the input dtype.
    if x.dtype == jnp.bfloat16:
        digits = 1
    elif x.dtype == jnp.float16:
        digits = 2
    else:
        digits = 3

    # Fold f output rows per matmul row for a lane-dense output (f*out_W~128).
    f = _choose_fold(G, R, out_W, max_fold=max_fold)
    Gf = G // f
    Rf = f * R
    Wf = f * out_W

    xr = x.reshape(Gf, Rf)     # pure reshape: no data movement / transpose

    # Block-diagonal 0/1 pooling matrix: fused column o selects the kh*kw
    # inputs of output column o within fold block o // out_W.
    j = jnp.arange(Rf)
    o = jnp.arange(Wf)
    same_fold = (j // R)[:, None] == (o // out_W)[None, :]
    same_col = (((j % R) % W) // kw)[:, None] == (o % out_W)[None, :]
    A = (same_fold & same_col).astype(jnp.bfloat16)

    itemsize = jnp.dtype(x.dtype).itemsize
    GT = _choose_block_rows(Gf, Rf * itemsize, block_bytes)
    num_blocks = pl.cdiv(Gf, GT)

    kernel = functools.partial(_pool_kernel, inv=1.0 / float(kh * kw),
                               digits=digits)
    flops = digits * 2 * Gf * Rf * Wf
    bytes_accessed = (Gf * Rf * itemsize          # input
                      + Rf * Wf * 2               # pooling matrix (bf16)
                      + Gf * Wf * itemsize)       # output

    out = pl.pallas_call(
        kernel,
        out_shape=jax.ShapeDtypeStruct((Gf, Wf), x.dtype),
        grid=(num_blocks,),
        in_specs=[
            # Lane-dense input tile: last dim Rf == full array dim, first dim
            # sublane-aligned (or the full extent).  ~4 MiB per tile.
            pl.BlockSpec((GT, Rf), lambda i: (i, 0)),
            # Small pooling matrix: constant block index -> stays resident.
            pl.BlockSpec((Rf, Wf), lambda i: (0, 0)),
        ],
        out_specs=pl.BlockSpec((GT, Wf), lambda i: (i, 0)),
        compiler_params=pltpu.CompilerParams(
            dimension_semantics=("parallel",),
            vmem_limit_bytes=32 << 20),
        cost_estimate=pl.CostEstimate(
            flops=int(flops),
            transcendentals=0,
            bytes_accessed=int(bytes_accessed)),
    )(xr, A)

    return out.reshape(N, C, out_H, out_W)


if __name__ == "__main__":
    key = jax.random.PRNGKey(0)
    k0, k1, k2 = jax.random.split(key, 3)

    def reference(x, oh, ow):
        N, C, H, W = x.shape
        return x.astype(jnp.float32).reshape(
            N, C, oh, H // oh, ow, W // ow).mean(axis=(3, 5))

    # Main check: f32 input, fold active (f=16 -> 128-wide lane-dense output).
    x = jax.random.normal(k0, (2, 4, 16, 16), dtype=jnp.float32)
    y = jax.block_until_ready(adaptive_avg_pool2d_efficient(x, 8))
    ref = reference(x, 8, 8)
    assert y.shape == (2, 4, 8, 8), y.shape
    assert y.dtype == x.dtype, y.dtype
    assert jnp.allclose(y, ref, atol=1e-6, rtol=1e-6), "mismatch (main)"

    # Ragged multi-block check: fold disabled, G=44 rows with GT=8 -> 6 grid
    # steps, last one a partial (masked) boundary block.
    x2 = jax.random.normal(k1, (1, 4, 44, 16), dtype=jnp.float32)
    y2 = jax.block_until_ready(adaptive_avg_pool2d_efficient(
        x2, (11, 8), block_bytes=2048, max_fold=1))
    ref2 = reference(x2, 11, 8)
    assert y2.shape == (1, 4, 11, 8), y2.shape
    assert jnp.allclose(y2, ref2, atol=1e-6, rtol=1e-6), "mismatch (ragged)"

    # bf16 fast path (single-digit MXU pass).
    x3 = jax.random.normal(k2, (2, 4, 16, 16), dtype=jnp.float32).astype(
        jnp.bfloat16)
    y3 = jax.block_until_ready(adaptive_avg_pool2d_efficient(x3, 8))
    ref3 = reference(x3, 8, 8).astype(jnp.bfloat16).astype(jnp.float32)
    assert y3.dtype == jnp.bfloat16, y3.dtype
    assert jnp.allclose(y3.astype(jnp.float32), ref3, atol=2e-2, rtol=2e-2), \
        "mismatch (bf16 fast path)"

    print("KERNEL_OK")
</pallas_src>

<mosaic_0001>
module attributes {stable_mosaic.version = 11 : i64} {
  func.func @_pool_kernel(%arg0: i32, %arg1: memref<4x512xf32, #tpu.memory_space<vmem>>, %arg2: memref<512x128xbf16, #tpu.memory_space<vmem>>, %arg3: memref<4x128xf32, #tpu.memory_space<vmem>>) attributes {dimension_semantics = [#tpu.dimension_semantics<parallel>], iteration_bounds = array<i64: 1>, scalar_prefetch = 0 : i64, scratch_operands = 0 : i64, tpu.core_type = #tpu.core_type<tc>, window_params = [{transform_indices = @transform_0, window_bounds = array<i64: 4, 512>}, {pipeline_mode = #tpu.pipeline_mode<synchronous>, transform_indices = @transform_1, window_bounds = array<i64: 512, 128>}, {transform_indices = @transform_2, window_bounds = array<i64: 4, 128>}]} {
    %c0 = arith.constant 0 : index
    %c0_0 = arith.constant 0 : index
    %0 = vector.load %arg2[%c0, %c0_0] : memref<512x128xbf16, #tpu.memory_space<vmem>>, vector<512x128xbf16>
    %c0_1 = arith.constant 0 : index
    %c0_2 = arith.constant 0 : index
    %1 = vector.load %arg1[%c0_1, %c0_2] : memref<4x512xf32, #tpu.memory_space<vmem>>, vector<4x512xf32>
    %2 = arith.truncf %1 : vector<4x512xf32> to vector<4x512xbf16>
    %cst = arith.constant dense<0.000000e+00> : vector<4x128xf32>
    %3 = tpu.matmul %2, %0, %cst {dimension_numbers = #tpu.dot_dimension_numbers<[1], [0], [0], [1], [0, 0, 1, 1], [], []>} : vector<4x512xbf16>, vector<512x128xbf16>, vector<4x128xf32> -> vector<4x128xf32>
    %4 = arith.extf %2 : vector<4x512xbf16> to vector<4x512xf32>
    %5 = arith.subf %1, %4 : vector<4x512xf32>
    %6 = arith.truncf %5 : vector<4x512xf32> to vector<4x512xbf16>
    %cst_3 = arith.constant dense<0.000000e+00> : vector<4x128xf32>
    %7 = tpu.matmul %6, %0, %cst_3 {dimension_numbers = #tpu.dot_dimension_numbers<[1], [0], [0], [1], [0, 0, 1, 1], [], []>} : vector<4x512xbf16>, vector<512x128xbf16>, vector<4x128xf32> -> vector<4x128xf32>
    %8 = arith.addf %3, %7 : vector<4x128xf32>
    %9 = arith.extf %6 : vector<4x512xbf16> to vector<4x512xf32>
    %10 = arith.subf %5, %9 : vector<4x512xf32>
    %11 = arith.truncf %10 : vector<4x512xf32> to vector<4x512xbf16>
    %cst_4 = arith.constant dense<0.000000e+00> : vector<4x128xf32>
    %12 = tpu.matmul %11, %0, %cst_4 {dimension_numbers = #tpu.dot_dimension_numbers<[1], [0], [0], [1], [0, 0, 1, 1], [], []>} : vector<4x512xbf16>, vector<512x128xbf16>, vector<4x128xf32> -> vector<4x128xf32>
    %13 = arith.addf %8, %12 : vector<4x128xf32>
    %cst_5 = arith.constant 2.500000e-01 : f32
    %14 = vector.broadcast %cst_5 : f32 to vector<4x128xf32>
    %15 = arith.mulf %13, %14 : vector<4x128xf32>
    %c0_6 = arith.constant 0 : index
    %c0_7 = arith.constant 0 : index
    %16 = vector.load %arg3[%c0_6, %c0_7] : memref<4x128xf32, #tpu.memory_space<vmem>>, vector<4x128xf32>
    tpu.vector_store %arg3[%c0_6, %c0_7], %15 {strides = array<i32>} : memref<4x128xf32, #tpu.memory_space<vmem>>, vector<4x128xf32>,
    return
  }
  func.func @transform_0(%arg0: i32) -> (i32, i32) {
    %c0_i32 = arith.constant 0 : i32
    %c0_i32_0 = arith.constant 0 : i32
    return %arg0, %c0_i32 : i32, i32
  }
  func.func @transform_1(%arg0: i32) -> (i32, i32) {
    %c0_i32 = arith.constant 0 : i32
    %c0_i32_0 = arith.constant 0 : i32
    %c0_i32_1 = arith.constant 0 : i32
    return %c0_i32, %c0_i32_0 : i32, i32
  }
  func.func @transform_2(%arg0: i32) -> (i32, i32) {
    %c0_i32 = arith.constant 0 : i32
    %c0_i32_0 = arith.constant 0 : i32
    return %arg0, %c0_i32 : i32, i32
  }
}

</mosaic_0001>

<bundles_post_ra>
// kernel: tpu_custom_call.1
= control target key start
LH: loop header
LB: loop body
LE: loop exit
PB: predicated region body
PF: predicated region fallthrough
CT: control target
= control target key end

     0   :  { %7 = vsyncpa [#allocation3], 0  ;;  %s1120_s0 = inlined_call_operand.hbm [shape: f32[4,512], index: 0, kind: input, shape index: {}]   ;;  %s1121_s1 = inlined_call_operand.hbm [shape: bf16[512,128], index: 1, kind: input, shape index: {}]   ;;  %s1122_s2 = inlined_call_operand.hbm [shape: f32[4,128], index: 2, kind: output, shape index: {}]  }
   0x1   :  { %8 = vsyncpa [#allocation6], 0 }
   0x2   :  { %9 = vsyncpa [#allocation4], 0  ;;  %s889_s9 = smov [#allocation2]   ;;  %s890_s11 = smov [#allocation5]  }
   0x3   :  { %s16_s10 = sshll.u32 %s889_s9, 4  ;;  %s25_s12 = sshll.u32 %s890_s11, 4  ;;  %s17_s10 = int_to_ptr.vmem [resolvable:$true] %s16_s10  ;;  %s909_s12 = int_to_ptr.vmem [resolvable:$true] %s25_s12 }
   0x4   :  { %s817_s15 = scalar_lea.hbm %s1120_s0, 256 }
   0x5   :  { %p818_p0 = scmp.ne.s32.totalorder %s1120_s0, %s817_s15  ;;  %p821_p1 = scmp.lt.u32.totalorder %s817_s15, %s1120_s0 }
   0x7   :  { %p823_p2 = pnand %p821_p1, %p818_p0 }
   0x9   :  { %826 = shalt.err (!%p823_p2)
}
   0xa   :  { %s827_s20 = scalar_lea.vmem %s17_s10, 256  ;;  %p832_p4 = scmp.lt.s32.totalorder %s17_s10, %s17_s10 }
   0xb   :  { %p828_p3 = scmp.ne.s32.totalorder %s17_s10, %s827_s20  ;;  %p833_p5 = scmp.lt.s32.totalorder %s827_s20, %s827_s20 }
   0xd   :  { %p834_p6 = por %p833_p5, %p832_p4 }
   0xf   :  { %p835_p7 = pnand %p834_p6, %p828_p3 }
  0x11   :  { %838 = shalt.err (!%p835_p7)
}
  0x12   :  { %19 = dma.hbm_to_vmem [thread:$0]  %s1120_s0, 256, %s17_s10, [#allocation3]  }
  0x13   :  { %s839_s25 = scalar_lea.hbm %s1121_s1, 4096 }
  0x14   :  { %p840_p8 = scmp.ne.s32.totalorder %s1121_s1, %s839_s25  ;;  %p843_p9 = scmp.lt.u32.totalorder %s839_s25, %s1121_s1 }
  0x16   :  { %p845_p10 = pnand %p843_p9, %p840_p8 }
  0x18   :  { %848 = shalt.err (!%p845_p10)
}
  0x19   :  { %s849_s30 = scalar_lea.vmem %s909_s12, 4096  ;;  %p854_p12 = scmp.lt.s32.totalorder %s909_s12, %s909_s12 }
  0x1a   :  { %p850_p11 = scmp.ne.s32.totalorder %s909_s12, %s849_s30  ;;  %p855_p13 = scmp.lt.s32.totalorder %s849_s30, %s849_s30 }
  0x1c   :  { %p856_p0 = por %p855_p13, %p854_p12 }
  0x1e   :  { %p857_p1 = pnand %p856_p0, %p850_p11 }
  0x20   :  { %860 = shalt.err (!%p857_p1)
}
  0x21   :  { %s891_s0 = smov 64   ;;  %s892_s3 = smov 4  }
  0x22   :  { %31 = dma.hbm_to_vmem [thread:$0]  %s1121_s1, 4096, %s909_s12, [#allocation6], %s891_s0, %s891_s0, %s892_s3  }
  0x23   :  { %883 = dma.done.wait [#allocation3], 256  }
  0x24   :  { %884 = vsyncadd [#allocation3], 4294967040 }
  0x25   :  { %885 = dma.done.wait [#allocation6], 4096  }
  0x26   :  { %886 = vsyncadd [#allocation6], 4294963200  ;;  %v940_v0 = vld [vmem:[#allocation5 + $0x40] sm:$0xff]   ;;  %v951_v4 = vld [vmem:[#allocation5 + $0x48] sm:$0xff]   ;;  %s893_s1 = smov [#allocation7]  }
  0x27   :  { %v942_v1 = vld [vmem:[#allocation5 + $0xc0] sm:$0xff]   ;;  %646 = vmatprep.subr.bf16.mxu0 %v940_v0  ;;  %v954_v5 = vld [vmem:[#allocation5 + $0xc8] sm:$0xff]   ;;  %v963_v8 = vld [vmem:[#allocation5 + $0x50] sm:$0xff]   ;;  %s604_s6 = sshll.u32 %s893_s1, 4  ;;  %s605_s6 = int_to_ptr.vmem [resolvable:$true] %s604_s6 }
  0x28   :  { %v945_v2 = vld [vmem:[#allocation5] sm:$0xff]   ;;  %668 = vmatprep.subr.bf16.mxu1 %v942_v1  ;;  %v957_v6 = vld [vmem:[#allocation5 + $0x8] sm:$0xff]   ;;  %v966_v9 = vld [vmem:[#allocation5 + $0xd0] sm:$0xff]   ;;  %s861_s7 = scalar_lea.vmem %s605_s6, 64  ;;  %p866_p3 = scmp.lt.s32.totalorder %s605_s6, %s605_s6 }
  0x29   :  { %v948_v3 = vld [vmem:[#allocation5 + $0x80] sm:$0xff]   ;;  %647 = vmatpush3.bf16.msra.mxu0 %v945_v2  ;;  %v960_v7 = vld [vmem:[#allocation5 + $0x88] sm:$0xff]   ;;  %v969_v10 = vld [vmem:[#allocation5 + $0x10] sm:$0xff]   ;;  %p862_p2 = scmp.ne.s32.totalorder %s605_s6, %s861_s7  ;;  %p867_p4 = scmp.lt.s32.totalorder %s861_s7, %s861_s7 }
  0x2a   :  { %669 = vmatpush3.bf16.msra.mxu1 %v948_v3  ;;  %648 = vmatprep.subr.bf16.mxu0 %v951_v4  ;;  %v972_v11 = vld [vmem:[#allocation5 + $0x90] sm:$0xff]   ;;  %v975_v12 = vld [vmem:[#allocation5 + $0x58] sm:$0xff]   ;;  %v987_v16 = vld [vmem:[#allocation5 + $0x60] sm:$0xff]  }
  0x2b   :  { %670 = vmatprep.subr.bf16.mxu1 %v954_v5  ;;  %v978_v13 = vld [vmem:[#allocation5 + $0xd8] sm:$0xff]   ;;  %v990_v17 = vld [vmem:[#allocation5 + $0xe0] sm:$0xff]   ;;  %v999_v20 = vld [vmem:[#allocation5 + $0x68] sm:$0xff]   ;;  %p868_p5 = por %p867_p4, %p866_p3 }
  0x2c   :  { %v981_v14 = vld [vmem:[#allocation5 + $0x18] sm:$0xff]   ;;  %v993_v18 = vld [vmem:[#allocation5 + $0x20] sm:$0xff]   ;;  %v1002_v21 = vld [vmem:[#allocation5 + $0xe8] sm:$0xff]  }
  0x2d   :  { %649 = vmatpush3.bf16.msra.mxu0 %v957_v6  ;;  %v984_v15 = vld [vmem:[#allocation5 + $0x98] sm:$0xff]   ;;  %v996_v19 = vld [vmem:[#allocation5 + $0xa0] sm:$0xff]   ;;  %v1005_v22 = vld [vmem:[#allocation5 + $0x28] sm:$0xff]   ;;  %p869_p6 = pnand %p868_p5, %p862_p2 }
  0x2e   :  { %671 = vmatpush3.bf16.msra.mxu1 %v960_v7  ;;  %650 = vmatprep.subr.bf16.mxu0 %v963_v8  ;;  %v1008_v23 = vld [vmem:[#allocation5 + $0xa8] sm:$0xff]   ;;  %v1011_v24 = vld [vmem:[#allocation5 + $0x70] sm:$0xff]   ;;  %v1023_v28 = vld [vmem:[#allocation5 + $0x78] sm:$0xff]  }
  0x2f   :  { %672 = vmatprep.subr.bf16.mxu1 %v966_v9  ;;  %v1014_v25 = vld [vmem:[#allocation5 + $0xf0] sm:$0xff]   ;;  %v1026_v29 = vld [vmem:[#allocation5 + $0xf8] sm:$0xff]  }
  0x30   :  { %v1017_v26 = vld [vmem:[#allocation5 + $0x30] sm:$0xff]   ;;  %v1029_v30 = vld [vmem:[#allocation5 + $0x38] sm:$0xff]  }
  0x31   :  { %651 = vmatpush3.bf16.msra.mxu0 %v969_v10  ;;  %v1020_v27 = vld [vmem:[#allocation5 + $0xb0] sm:$0xff]   ;;  %v1032_v31 = vld [vmem:[#allocation5 + $0xb8] sm:$0xff]  }
  0x32   :  { %673 = vmatpush3.bf16.msra.mxu1 %v972_v11  ;;  %652 = vmatprep.subr.bf16.mxu0 %v975_v12  ;;  %v103_v32 = vld [vmem:[#allocation2] sm:$0xff]  ;;  %v104_v33 = vld [vmem:[#allocation2 + $0x8] sm:$0xff] }
  0x33   :  { %674 = vmatprep.subr.bf16.mxu1 %v978_v13  ;;  %v107_v34 = vcombine.high %v103_v32, %v103_v32  ;;  %v1036_v35 = vpack.c.bf16 %v103_v32, %v103_v32  ;;  %v108_v36 = vcombine.high %v104_v33, %v104_v33  ;;  %v1038_v37 = vpack.c.bf16 %v104_v33, %v104_v33 }
  0x35   :  { %653 = vmatpush3.bf16.msra.mxu0 %v981_v14  ;;  %v112_v38 = vpack.c.bf16 %v107_v34, %v107_v34  ;;  %v115_v39 = vunpack.c.l.bf16 %v1036_v35  ;;  %v114_v40 = vpack.c.bf16 %v108_v36, %v108_v36  ;;  %v117_v41 = vunpack.c.l.bf16 %v1038_v37 }
  0x36   :  { %675 = vmatpush3.bf16.msra.mxu1 %v984_v15  ;;  %654 = vmatprep.subr.bf16.mxu0 %v987_v16 }
  0x37   :  { %676 = vmatprep.subr.bf16.mxu1 %v990_v17  ;;  %v116_v42 = vunpack.c.l.bf16 %v112_v38  ;;  %v118_v43 = vunpack.c.l.bf16 %v114_v40 }
  0x39   :  { %655 = vmatpush3.bf16.msra.mxu0 %v993_v18  ;;  %v123_v44 = vcombine.low %v115_v39, %v116_v42  ;;  %v124_v45 = vcombine.low %v117_v41, %v118_v43 }
  0x3a   :  { %677 = vmatpush3.bf16.msra.mxu1 %v996_v19  ;;  %656 = vmatprep.subr.bf16.mxu0 %v999_v20 }
  0x3b   :  { %678 = vmatprep.subr.bf16.mxu1 %v1002_v21  ;;  %v127_v46 = vsub.f32 %v103_v32, %v123_v44  ;;  %v128_v47 = vsub.f32 %v104_v33, %v124_v45 }
  0x3d   :  { %657 = vmatpush3.bf16.msra.mxu0 %v1005_v22  ;;  %v131_v48 = vcombine.high %v127_v46, %v127_v46  ;;  %v132_v49 = vcombine.high %v128_v47, %v128_v47  ;;  %v135_v50 = vpack.c.bf16 %v127_v46, %v127_v46  ;;  %v137_v51 = vpack.c.bf16 %v128_v47, %v128_v47 }
  0x3e   :  { %679 = vmatpush3.bf16.msra.mxu1 %v1008_v23  ;;  %658 = vmatprep.subr.bf16.mxu0 %v1011_v24 }
  0x3f   :  { %680 = vmatprep.subr.bf16.mxu1 %v1014_v25  ;;  %v136_v52 = vpack.c.bf16 %v131_v48, %v131_v48  ;;  %v138_v53 = vpack.c.bf16 %v132_v49, %v132_v49  ;;  %v491_v56 = vunpack.c.l.bf16 %v135_v50  ;;  %v493_v57 = vunpack.c.l.bf16 %v137_v51 }
  0x41   :  { %659 = vmatpush3.bf16.msra.mxu0 %v1017_v26  ;;  %363 = vmatprep.mubr.bf16.mxu0 %v136_v52  ;;  %v492_v54 = vunpack.c.l.bf16 %v136_v52  ;;  %v494_v55 = vunpack.c.l.bf16 %v138_v53 }
  0x42   :  { %681 = vmatpush3.bf16.msra.mxu1 %v1020_v27  ;;  %660 = vmatprep.subr.bf16.mxu0 %v1023_v28 }
  0x43   :  { %682 = vmatprep.subr.bf16.mxu1 %v1026_v29  ;;  %403 = vmatprep.mubr.bf16.mxu1 %v138_v53  ;;  %v499_v58 = vcombine.low %v491_v56, %v492_v54  ;;  %v500_v59 = vcombine.low %v493_v57, %v494_v55 }
  0x45   :  { %661 = vmatpush3.bf16.msra.mxu0 %v1029_v30  ;;  %v503_v60 = vsub.f32 %v127_v46, %v499_v58  ;;  %v504_v61 = vsub.f32 %v128_v47, %v500_v59 }
  0x46   :  { %683 = vmatpush3.bf16.msra.mxu1 %v1032_v31  ;;  %690 = vmatprep.subr.bf16.mxu0 %v940_v0 }
  0x47   :  { %712 = vmatprep.subr.bf16.mxu1 %v942_v1  ;;  %v507_v62 = vcombine.high %v503_v60, %v503_v60  ;;  %v508_v63 = vcombine.high %v504_v61, %v504_v61 }
  0x48   :  { %364 = vmatmul.mubr.bf16.vlgmr.msra.gmra.mrb[0].mxu0 %v135_v50 }
  0x49   :  { %404 = vmatmul.mubr.bf16.vlgmr.msra.gmra.mrb[0].mxu1 %v137_v51  ;;  %691 = vmatpush3.bf16.msra.mxu0 %v945_v2  ;;  %v512_v32 = vpack.c.bf16 %v507_v62, %v507_v62  ;;  %v514_v33 = vpack.c.bf16 %v508_v63, %v508_v63 }
  0x4a   :  { %713 = vmatpush3.bf16.msra.mxu1 %v948_v3  ;;  %692 = vmatprep.subr.bf16.mxu0 %v951_v4 }
  0x4b   :  { %714 = vmatprep.subr.bf16.mxu1 %v954_v5  ;;  %443 = vmatprep.mubr.bf16.mxu0 %v112_v38 }
  0x4c   :  { %483 = vmatprep.mubr.bf16.mxu1 %v114_v40 }
  0x4d   :  { %693 = vmatpush3.bf16.msra.mxu0 %v957_v6 }
  0x4e   :  { %715 = vmatpush3.bf16.msra.mxu1 %v960_v7  ;;  %694 = vmatprep.subr.bf16.mxu0 %v963_v8 }
  0x4f   :  { %716 = vmatprep.subr.bf16.mxu1 %v966_v9 }
  0x51   :  { %695 = vmatpush3.bf16.msra.mxu0 %v969_v10 }
  0x52   :  { %717 = vmatpush3.bf16.msra.mxu1 %v972_v11  ;;  %696 = vmatprep.subr.bf16.mxu0 %v975_v12 }
  0x53   :  { %718 = vmatprep.subr.bf16.mxu1 %v978_v13 }
  0x55   :  { %697 = vmatpush3.bf16.msra.mxu0 %v981_v14 }
  0x56   :  { %719 = vmatpush3.bf16.msra.mxu1 %v984_v15  ;;  %698 = vmatprep.subr.bf16.mxu0 %v987_v16 }
  0x57   :  { %720 = vmatprep.subr.bf16.mxu1 %v990_v17 }
  0x59   :  { %699 = vmatpush3.bf16.msra.mxu0 %v993_v18 }
  0x5a   :  { %721 = vmatpush3.bf16.msra.mxu1 %v996_v19  ;;  %700 = vmatprep.subr.bf16.mxu0 %v999_v20 }
  0x5b   :  { %722 = vmatprep.subr.bf16.mxu1 %v1002_v21 }
  0x5d   :  { %701 = vmatpush3.bf16.msra.mxu0 %v1005_v22 }
  0x5e   :  { %723 = vmatpush3.bf16.msra.mxu1 %v1008_v23  ;;  %702 = vmatprep.subr.bf16.mxu0 %v1011_v24 }
  0x5f   :  { %724 = vmatprep.subr.bf16.mxu1 %v1014_v25 }
  0x61   :  { %703 = vmatpush3.bf16.msra.mxu0 %v1017_v26 }
  0x62   :  { %725 = vmatpush3.bf16.msra.mxu1 %v1020_v27  ;;  %704 = vmatprep.subr.bf16.mxu0 %v1023_v28 }
  0x63   :  { %726 = vmatprep.subr.bf16.mxu1 %v1026_v29 }
  0x65   :  { %705 = vmatpush3.bf16.msra.mxu0 %v1029_v30 }
  0x66   :  { %727 = vmatpush3.bf16.msra.mxu1 %v1032_v31  ;;  %734 = vmatprep.subr.bf16.mxu0 %v940_v0  ;;  %v511_v0 = vpack.c.bf16 %v503_v60, %v503_v60 }
  0x67   :  { %756 = vmatprep.subr.bf16.mxu1 %v942_v1  ;;  %v513_v1 = vpack.c.bf16 %v504_v61, %v504_v61 }
  0x68   :  { %444 = vmatmul.mubr.bf16.vlgmr.msra.gmra.mrb[4].mxu0 %v1036_v35 }
  0x69   :  { %484 = vmatmul.mubr.bf16.vlgmr.msra.gmra.mrb[4].mxu1 %v1038_v37  ;;  %735 = vmatpush3.bf16.msra.mxu0 %v945_v2 }
  0x6a   :  { %757 = vmatpush3.bf16.msra.mxu1 %v948_v3  ;;  %736 = vmatprep.subr.bf16.mxu0 %v951_v4 }
  0x6b   :  { %758 = vmatprep.subr.bf16.mxu1 %v954_v5  ;;  %547 = vmatprep.mubr.bf16.mxu0 %v512_v32 }
  0x6c   :  { %587 = vmatprep.mubr.bf16.mxu1 %v514_v33 }
  0x6d   :  { %737 = vmatpush3.bf16.msra.mxu0 %v957_v6 }
  0x6e   :  { %759 = vmatpush3.bf16.msra.mxu1 %v960_v7  ;;  %738 = vmatprep.subr.bf16.mxu0 %v963_v8 }
  0x6f   :  { %760 = vmatprep.subr.bf16.mxu1 %v966_v9 }
  0x71   :  { %739 = vmatpush3.bf16.msra.mxu0 %v969_v10 }
  0x72   :  { %761 = vmatpush3.bf16.msra.mxu1 %v972_v11  ;;  %740 = vmatprep.subr.bf16.mxu0 %v975_v12 }
  0x73   :  { %762 = vmatprep.subr.bf16.mxu1 %v978_v13 }
  0x75   :  { %741 = vmatpush3.bf16.msra.mxu0 %v981_v14 }
  0x76   :  { %763 = vmatpush3.bf16.msra.mxu1 %v984_v15  ;;  %742 = vmatprep.subr.bf16.mxu0 %v987_v16 }
  0x77   :  { %764 = vmatprep.subr.bf16.mxu1 %v990_v17 }
  0x79   :  { %743 = vmatpush3.bf16.msra.mxu0 %v993_v18 }
  0x7a   :  { %765 = vmatpush3.bf16.msra.mxu1 %v996_v19  ;;  %744 = vmatprep.subr.bf16.mxu0 %v999_v20 }
  0x7b   :  { %766 = vmatprep.subr.bf16.mxu1 %v1002_v21 }
  0x7d   :  { %745 = vmatpush3.bf16.msra.mxu0 %v1005_v22 }
  0x7e   :  { %767 = vmatpush3.bf16.msra.mxu1 %v1008_v23  ;;  %746 = vmatprep.subr.bf16.mxu0 %v1011_v24 }
  0x7f   :  { %768 = vmatprep.subr.bf16.mxu1 %v1014_v25 }
  0x81   :  { %747 = vmatpush3.bf16.msra.mxu0 %v1017_v26 }
  0x82   :  { %769 = vmatpush3.bf16.msra.mxu1 %v1020_v27  ;;  %748 = vmatprep.subr.bf16.mxu0 %v1023_v28 }
  0x83   :  { %770 = vmatprep.subr.bf16.mxu1 %v1026_v29 }
  0x85   :  { %749 = vmatpush3.bf16.msra.mxu0 %v1029_v30 }
  0x86   :  { %771 = vmatpush3.bf16.msra.mxu1 %v1032_v31 }
  0x88   :  { %548 = vmatmul.mubr.bf16.vlgmr.msra.gmra.mrb[8].mxu0 %v511_v0 }
  0x89   :  { %588 = vmatmul.mubr.bf16.vlgmr.msra.gmra.mrb[8].mxu1 %v513_v1 }
 0x11b   :  { %v662_v2 = vpop.f32.mrb[0].mxu0 }
 0x11c   :  { %v684_v3 = vpop.f32.mrb[0].mxu1  ;;  %v663_v4 = vpop.f32.mrb[1].mxu0 }
 0x11d   :  { %v685_v5 = vpop.f32.mrb[1].mxu1  ;;  %v664_v6 = vadd.f32 %v663_v4, %v662_v2  ;;  %v665_v8 = vpop.f32.mrb[2].mxu0 }
 0x11e   :  { %v686_v7 = vadd.f32 %v685_v5, %v684_v3  ;;  %v687_v9 = vpop.f32.mrb[2].mxu1  ;;  %v666_v10 = vpop.f32.mrb[3].mxu0 }
 0x11f   :  { %v688_v11 = vpop.f32.mrb[3].mxu1 }
 0x120   :  { %v406_v12 = vadd.f32 %v686_v7, %v664_v6 }
 0x13b   :  { %v706_v13 = vpop.f32.mrb[4].mxu0 }
 0x13c   :  { %v728_v14 = vpop.f32.mrb[4].mxu1  ;;  %v707_v15 = vpop.f32.mrb[5].mxu0 }
 0x13d   :  { %v729_v16 = vpop.f32.mrb[5].mxu1  ;;  %v708_v17 = vadd.f32 %v707_v15, %v706_v13  ;;  %v709_v19 = vpop.f32.mrb[6].mxu0 }
 0x13e   :  { %v730_v18 = vadd.f32 %v729_v16, %v728_v14  ;;  %v731_v20 = vpop.f32.mrb[6].mxu1  ;;  %v710_v21 = vpop.f32.mrb[7].mxu0 }
 0x13f   :  { %v732_v22 = vpop.f32.mrb[7].mxu1  ;;  %v446_v23 = vadd.f32 %v708_v17, %v406_v12 }
 0x141   :  { %v486_v24 = vadd.f32 %v730_v18, %v446_v23 }
 0x15b   :  { %v750_v25 = vpop.f32.mrb[8].mxu0 }
 0x15c   :  { %v772_v26 = vpop.f32.mrb[8].mxu1  ;;  %v751_v27 = vpop.f32.mrb[9].mxu0 }
 0x15d   :  { %v773_v28 = vpop.f32.mrb[9].mxu1  ;;  %v752_v29 = vadd.f32 %v751_v27, %v750_v25  ;;  %v753_v31 = vpop.f32.mrb[10].mxu0 }
 0x15e   :  { %v774_v30 = vadd.f32 %v773_v28, %v772_v26  ;;  %v775_v34 = vpop.f32.mrb[10].mxu1  ;;  %v754_v35 = vpop.f32.mrb[11].mxu0 }
 0x15f   :  { %v776_v36 = vpop.f32.mrb[11].mxu1 }
 0x160   :  { %v590_v37 = vadd.f32 %v774_v30, %v752_v29 }
 0x162   :  { %v595_v38 = vadd.f32 %v590_v37, %v486_v24 }
 0x164   :  { %v596_v39 = vmul.f32 0.25, %v595_v38 }
 0x166   :  { %597 = vst [vmem:[#allocation7] sm:$0xf] %v596_v39 }
 0x167   :  { %872 = shalt.err (!%p869_p6)
}
 0x168   :  { %s873_s10 = scalar_lea.hbm %s1122_s2, 64 }
 0x169   :  { %p874_p7 = scmp.ne.s32.totalorder %s1122_s2, %s873_s10  ;;  %p877_p8 = scmp.lt.u32.totalorder %s873_s10, %s1122_s2 }
 0x16b   :  { %p879_p9 = pnand %p877_p8, %p874_p7 }
 0x16d   :  { %882 = shalt.err (!%p879_p9)
}
 0x16e   :  { %607 = dma.vmem_to_hbm [thread:$0]  %s605_s6, 64, %s1122_s2, [#allocation4]  }
 0x16f   :  { %887 = dma.done.wait [#allocation4], 64  }
 0x170   :  { %888 = vsyncadd [#allocation4], 4294967232 }
 0x171   :  { %611 = vsyncpa [#allocation3], 1 }
 0x172   :  { %612 = vsyncpa [#allocation6], 1 }
 0x173   :  { %613 = vsyncpa [#allocation4], 1 }

</bundles_post_ra>
